<compile_context>
chip_gen: v6e
topology: v6e:2x2x1
jax: 0.10.0
libtpu: 0.0.40
codegen_flags: <defaults>
</compile_context>

<pallas_src>
import functools

import jax
import jax.numpy as jnp
from jax.experimental import pallas as pl
from jax.experimental.pallas import tpu as pltpu

C_PAD = 128          # channel padding -> lane-dense VPU ops and unmasked stores
TILE = 512           # A row / contraction tile (>=512 rows per perf review)
VMEM_LIMIT = 64 * 1024 * 1024


def _round_up(x, m):
    return ((x + m - 1) // m) * m


def _pad2(m, rows, cols, dtype=jnp.float32):
    out = jnp.zeros((rows, cols), dtype)
    return out.at[: m.shape[0], : m.shape[1]].set(m.astype(dtype))


# --------------------------------------------------------------------------------
# Kernel 1: tiled aggregation  O = A_hat @ H   (A bf16 streamed, f32 accumulate)
# --------------------------------------------------------------------------------
def aggregate_kernel(a_ref, h_ref, o_ref, acc_ref):
    @pl.when(pl.program_id(1) == 0)
    def _init():
        acc_ref[...] = jnp.zeros_like(acc_ref)

    acc_ref[...] += jnp.dot(a_ref[...], h_ref[...],
                            preferred_element_type=jnp.float32)

    @pl.when(pl.program_id(1) == pl.num_programs(1) - 1)
    def _store():
        o_ref[...] = acc_ref[...]


def _aggregate(a_pad, h_pad):
    """A_pad: (Np, Np) bf16, h_pad: (Np, C_PAD) bf16 -> (Np, C_PAD) f32."""
    np_ = a_pad.shape[0]
    n_row_tiles = np_ // TILE
    n_k_tiles = np_ // TILE
    flops = 2 * np_ * np_ * C_PAD
    bytes_accessed = (np_ * np_ * 2                       # A (bf16)
                      + n_row_tiles * np_ * C_PAD * 2     # H re-streamed per row tile
                      + np_ * C_PAD * 4)                  # output (f32)
    return pl.pallas_call(
        aggregate_kernel,
        out_shape=jax.ShapeDtypeStruct((np_, C_PAD), jnp.float32),
        grid_spec=pltpu.PrefetchScalarGridSpec(
            num_scalar_prefetch=0,
            grid=(n_row_tiles, n_k_tiles),                 # reduction axis last
            in_specs=[
                pl.BlockSpec((TILE, TILE), lambda i, k: (i, k)),   # A row x K tile
                pl.BlockSpec((TILE, C_PAD), lambda i, k: (k, 0)),  # H K tile
            ],
            out_specs=pl.BlockSpec((TILE, C_PAD), lambda i, k: (i, 0)),
            scratch_shapes=[pltpu.VMEM((TILE, C_PAD), jnp.float32)],
        ),
        compiler_params=pltpu.CompilerParams(
            dimension_semantics=("parallel", "arbitrary"),
            vmem_limit_bytes=VMEM_LIMIT,
        ),
        cost_estimate=pl.CostEstimate(
            flops=int(flops), transcendentals=0,
            bytes_accessed=int(bytes_accessed)),
    )(a_pad, h_pad)


# --------------------------------------------------------------------------------
# Kernel 2/3/4: per-layer pointwise transforms on the small (Np, 128) feature block
# --------------------------------------------------------------------------------
def _bn_masked(h, gamma, beta, n_valid, eps=1e-5):
    # BatchNorm1d training semantics (biased variance) over the n_valid real rows.
    rows = jax.lax.broadcasted_iota(jnp.int32, h.shape, 0)
    valid = (rows < n_valid).astype(jnp.float32)
    inv_n = 1.0 / float(n_valid)
    mu = jnp.sum(h * valid, axis=0, keepdims=True) * inv_n
    diff = h - mu
    var = jnp.sum(diff * diff * valid, axis=0, keepdims=True) * inv_n
    return gamma * diff * jax.lax.rsqrt(var + eps) + beta


def transform1_kernel(ax_ref, w1_ref, b1_ref, g1_ref, be1_ref, w2_ref, o_ref,
                      *, n_valid):
    # conv1 finish: (A @ X) @ W1 + b1 -> BN -> ReLU -> (dropout) -> @ W2 (for conv2)
    h = jnp.dot(ax_ref[...], w1_ref[...],
                preferred_element_type=jnp.float32) + b1_ref[...]
    h = jnp.maximum(_bn_masked(h, g1_ref[...], be1_ref[...], n_valid), 0.0)
    # TODO(synk): F.dropout(training=True) is stochastic (torch RNG); identity here.
    o_ref[...] = jnp.dot(h, w2_ref[...],
                         preferred_element_type=jnp.float32).astype(o_ref.dtype)


def transform2_kernel(m_ref, b2_ref, g2_ref, be2_ref, w3_ref, o_ref, *, n_valid):
    # conv2 finish: + b2 -> BN -> ReLU -> @ W3 (for conv3)
    h = m_ref[...] + b2_ref[...]
    h = jnp.maximum(_bn_masked(h, g2_ref[...], be2_ref[...], n_valid), 0.0)
    o_ref[...] = jnp.dot(h, w3_ref[...],
                         preferred_element_type=jnp.float32).astype(o_ref.dtype)


def transform3_kernel(m_ref, b3_ref, g3_ref, be3_ref, wl_ref, bl_ref, o_ref,
                      *, n_valid):
    # conv3 finish: + b3 -> BN -> endLinear -> sigmoid
    h = m_ref[...] + b3_ref[...]
    h = _bn_masked(h, g3_ref[...], be3_ref[...], n_valid)
    z = jnp.dot(h, wl_ref[...], preferred_element_type=jnp.float32) + bl_ref[...]
    o_ref[...] = jax.nn.sigmoid(z)


def _transform(kernel_fn, inputs, out_dtype, n_valid):
    np_ = inputs[0].shape[0]
    vmem = pl.BlockSpec(memory_space=pltpu.MemorySpace.VMEM)
    return pl.pallas_call(
        functools.partial(kernel_fn, n_valid=n_valid),
        out_shape=jax.ShapeDtypeStruct((np_, C_PAD), out_dtype),
        in_specs=[vmem] * len(inputs),
        out_specs=vmem,
        compiler_params=pltpu.CompilerParams(vmem_limit_bytes=VMEM_LIMIT),
    )(*inputs)


# --------------------------------------------------------------------------------
# Plain-JAX glue: dense normalized adjacency (matches PyG gcn_norm w/ self-loops)
# --------------------------------------------------------------------------------
def build_normalized_adjacency(edge_index, edge_weight, num_nodes):
    src = edge_index[0]
    dst = edge_index[1]
    loop = jnp.arange(num_nodes, dtype=edge_index.dtype)
    src = jnp.concatenate([src, loop])
    dst = jnp.concatenate([dst, loop])
    w = jnp.concatenate([edge_weight, jnp.ones((num_nodes,), jnp.float32)])
    A = jnp.zeros((num_nodes, num_nodes), jnp.float32).at[dst, src].add(w)
    deg = jnp.sum(A, axis=1)
    dinv = jnp.where(deg > 0, 1.0 / jnp.sqrt(deg), 0.0)
    return dinv[:, None] * A * dinv[None, :]


def gcn_net_bench_forward(x, edge_index, edge_weight, params, num_nodes,
                          num_classes):
    n = num_nodes
    np_ = _round_up(n, TILE)

    # A_hat in bf16 (halves the dominant HBM stream), zero-padded to (Np, Np).
    a_hat = build_normalized_adjacency(edge_index, edge_weight, n)
    a_pad = jnp.zeros((np_, np_), jnp.bfloat16).at[:n, :n].set(
        a_hat.astype(jnp.bfloat16))

    # Node features padded to lane-dense (Np, 128) bf16.
    x_pad = jnp.zeros((np_, C_PAD), jnp.bfloat16).at[:n, :x.shape[1]].set(
        x.astype(jnp.bfloat16))

    # Zero-pad all parameters to 128-lane-dense shapes (padded channels stay 0).
    w1p = _pad2(params["w1"], C_PAD, C_PAD)
    b1p = _pad2(params["b1"], 1, C_PAD)
    g1p = _pad2(params["g1"], 1, C_PAD)
    be1p = _pad2(params["be1"], 1, C_PAD)
    w2p = _pad2(params["w2"], C_PAD, C_PAD)
    b2p = _pad2(params["b2"], 1, C_PAD)
    g2p = _pad2(params["g2"], 1, C_PAD)
    be2p = _pad2(params["be2"], 1, C_PAD)
    w3p = _pad2(params["w3"], C_PAD, C_PAD)
    b3p = _pad2(params["b3"], 1, C_PAD)
    g3p = _pad2(params["g3"], 1, C_PAD)
    be3p = _pad2(params["be3"], 1, C_PAD)
    wlp = _pad2(params["wl"], C_PAD, C_PAD)
    blp = _pad2(params["bl"], 1, C_PAD)

    # conv1 re-associated: (A @ X) @ W1  (A multiplies the 1-wide operand)
    ax = _aggregate(a_pad, x_pad)
    h1w2 = _transform(transform1_kernel, (ax, w1p, b1p, g1p, be1p, w2p),
                      jnp.bfloat16, n)
    # conv2: A @ (H1 @ W2), then bias/BN/ReLU and pre-multiply W3 for conv3
    m2 = _aggregate(a_pad, h1w2)
    h2w3 = _transform(transform2_kernel, (m2, b2p, g2p, be2p, w3p),
                      jnp.bfloat16, n)
    # conv3: A @ (H2 @ W3), then bias/BN, endLinear, sigmoid
    m3 = _aggregate(a_pad, h2w3)
    out_pad = _transform(transform3_kernel, (m3, b3p, g3p, be3p, wlp, blp),
                         jnp.float32, n)

    return out_pad[:n, :num_classes]


def init_params(key, num_node_features=1, num_classes=1):
    ks = jax.random.split(key, 8)
    f = jnp.float32

    def lin_w(k, fan_in, fan_out):
        bound = 1.0 / jnp.sqrt(jnp.maximum(fan_in, 1)).astype(f)
        return jax.random.uniform(k, (fan_in, fan_out), f, -bound, bound)

    return {
        # GCNConv 1: num_node_features -> 16
        "w1": lin_w(ks[0], num_node_features, 16),
        "b1": jnp.zeros((1, 16), f),
        "g1": jnp.ones((1, 16), f),
        "be1": jnp.zeros((1, 16), f),
        # GCNConv 2: 16 -> 4
        "w2": lin_w(ks[1], 16, 4),
        "b2": jnp.zeros((1, 4), f),
        "g2": jnp.ones((1, 4), f),
        "be2": jnp.zeros((1, 4), f),
        # GCNConv 3: 4 -> num_classes
        "w3": lin_w(ks[2], 4, num_classes),
        "b3": jnp.zeros((1, num_classes), f),
        "g3": jnp.ones((1, num_classes), f),
        "be3": jnp.zeros((1, num_classes), f),
        # endLinear: num_classes -> num_classes
        "wl": lin_w(ks[3], num_classes, num_classes),
        "bl": jax.random.uniform(ks[4], (1, num_classes), f, -1.0, 1.0),
    }


if __name__ == "__main__":
    NUM_NODES = 10
    NUM_NODE_FEATURES = 1
    NUM_CLASSES = 1

    key = jax.random.PRNGKey(0)
    k_x, k_w, k_p = jax.random.split(key, 3)

    # Node features (num_nodes, num_node_features)
    x = jax.random.normal(k_x, (NUM_NODES, NUM_NODE_FEATURES), jnp.float32)

    # Small deterministic bidirectional ring graph: 20 directed edges.
    src = jnp.arange(NUM_NODES, dtype=jnp.int32)
    dst = (src + 1) % NUM_NODES
    edge_index = jnp.stack([jnp.concatenate([src, dst]),
                            jnp.concatenate([dst, src])], axis=0)   # (2, 20)
    edge_weight = jax.random.uniform(k_w, (edge_index.shape[1],), jnp.float32,
                                     0.5, 1.5)

    params = init_params(k_p, NUM_NODE_FEATURES, NUM_CLASSES)

    out = gcn_net_bench_forward(x, edge_index, edge_weight, params,
                                NUM_NODES, NUM_CLASSES)
    out = jax.block_until_ready(out)

    assert out.shape == (NUM_NODES, NUM_CLASSES)
    assert bool(jnp.all(jnp.isfinite(out)))
    assert bool(jnp.all((out >= 0.0) & (out <= 1.0)))   # sigmoid range
    print("KERNEL_OK")
</pallas_src>

<mosaic_0001>
module attributes {stable_mosaic.version = 11 : i64} {
  func.func @aggregate_kernel(%arg0: i32, %arg1: i32, %arg2: memref<512x512xbf16, #tpu.memory_space<vmem>>, %arg3: memref<512x128xbf16, #tpu.memory_space<vmem>>, %arg4: memref<512x128xf32, #tpu.memory_space<vmem>>, %arg5: memref<512x128xf32, #tpu.memory_space<vmem>>) attributes {dimension_semantics = [#tpu.dimension_semantics<parallel>, #tpu.dimension_semantics<arbitrary>], iteration_bounds = array<i64: 1, 1>, scalar_prefetch = 0 : i64, scratch_operands = 1 : i64, tpu.core_type = #tpu.core_type<tc>, window_params = [{transform_indices = @transform_0, window_bounds = array<i64: 512, 512>}, {transform_indices = @transform_1, window_bounds = array<i64: 512, 128>}, {transform_indices = @transform_2, window_bounds = array<i64: 512, 128>}]} {
    %c0_i32 = arith.constant 0 : i32
    %0 = arith.cmpi eq, %arg1, %c0_i32 : i32
    %1 = arith.extui %0 : i1 to i32
    %c0_i32_0 = arith.constant 0 : i32
    %2 = arith.cmpi ne, %1, %c0_i32_0 : i32
    scf.if %2 {
      %cst_10 = arith.constant 0.000000e+00 : f32
      %12 = vector.broadcast %cst_10 : f32 to vector<512x128xf32>
      %c0_11 = arith.constant 0 : index
      %c0_12 = arith.constant 0 : index
      %13 = vector.load %arg5[%c0_11, %c0_12] : memref<512x128xf32, #tpu.memory_space<vmem>>, vector<512x128xf32>
      tpu.vector_store %arg5[%c0_11, %c0_12], %12 {strides = array<i32>} : memref<512x128xf32, #tpu.memory_space<vmem>>, vector<512x128xf32>,
    } else {
    }
    %c0 = arith.constant 0 : index
    %c0_1 = arith.constant 0 : index
    %3 = vector.load %arg5[%c0, %c0_1] : memref<512x128xf32, #tpu.memory_space<vmem>>, vector<512x128xf32>
    %c0_2 = arith.constant 0 : index
    %c0_3 = arith.constant 0 : index
    %4 = vector.load %arg2[%c0_2, %c0_3] : memref<512x512xbf16, #tpu.memory_space<vmem>>, vector<512x512xbf16>
    %c0_4 = arith.constant 0 : index
    %c0_5 = arith.constant 0 : index
    %5 = vector.load %arg3[%c0_4, %c0_5] : memref<512x128xbf16, #tpu.memory_space<vmem>>, vector<512x128xbf16>
    %cst = arith.constant dense<0.000000e+00> : vector<512x128xf32>
    %6 = tpu.matmul %4, %5, %cst {dimension_numbers = #tpu.dot_dimension_numbers<[1], [0], [0], [1], [0, 0, 1, 1], [], []>} : vector<512x512xbf16>, vector<512x128xbf16>, vector<512x128xf32> -> vector<512x128xf32>
    %7 = arith.addf %3, %6 : vector<512x128xf32>
    %c0_6 = arith.constant 0 : index
    %c0_7 = arith.constant 0 : index
    %8 = vector.load %arg5[%c0_6, %c0_7] : memref<512x128xf32, #tpu.memory_space<vmem>>, vector<512x128xf32>
    tpu.vector_store %arg5[%c0_6, %c0_7], %7 {strides = array<i32>} : memref<512x128xf32, #tpu.memory_space<vmem>>, vector<512x128xf32>,
    %c0_i32_8 = arith.constant 0 : i32
    %9 = arith.cmpi eq, %arg1, %c0_i32_8 : i32
    %10 = arith.extui %9 : i1 to i32
    %c0_i32_9 = arith.constant 0 : i32
    %11 = arith.cmpi ne, %10, %c0_i32_9 : i32
    scf.if %11 {
      %c0_10 = arith.constant 0 : index
      %c0_11 = arith.constant 0 : index
      %12 = vector.load %arg5[%c0_10, %c0_11] : memref<512x128xf32, #tpu.memory_space<vmem>>, vector<512x128xf32>
      %c0_12 = arith.constant 0 : index
      %c0_13 = arith.constant 0 : index
      %13 = vector.load %arg4[%c0_12, %c0_13] : memref<512x128xf32, #tpu.memory_space<vmem>>, vector<512x128xf32>
      tpu.vector_store %arg4[%c0_12, %c0_13], %12 {strides = array<i32>} : memref<512x128xf32, #tpu.memory_space<vmem>>, vector<512x128xf32>,
    } else {
    }
    return
  }
  func.func @transform_0(%arg0: i32, %arg1: i32) -> (i32, i32) {
    %c0_i32 = arith.constant 0 : i32
    return %arg0, %arg1 : i32, i32
  }
  func.func @transform_1(%arg0: i32, %arg1: i32) -> (i32, i32) {
    %c0_i32 = arith.constant 0 : i32
    %c0_i32_0 = arith.constant 0 : i32
    return %arg1, %c0_i32 : i32, i32
  }
  func.func @transform_2(%arg0: i32, %arg1: i32) -> (i32, i32) {
    %c0_i32 = arith.constant 0 : i32
    %c0_i32_0 = arith.constant 0 : i32
    return %arg0, %c0_i32 : i32, i32
  }
}

</mosaic_0001>

<bundles_post_ra>
// kernel: tpu_custom_call.1
= control target key start
LH: loop header
LB: loop body
LE: loop exit
PB: predicated region body
PF: predicated region fallthrough
CT: control target
= control target key end

     0   :  { %7 = vsyncpa [#allocation4], 0  ;;  %s2578_s0 = inlined_call_operand.hbm [shape: bf16[512,512], index: 0, kind: input, shape index: {}]   ;;  %s2579_s1 = inlined_call_operand.hbm [shape: bf16[512,128], index: 1, kind: input, shape index: {}]   ;;  %s2580_s2 = inlined_call_operand.hbm [shape: f32[512,128], index: 2, kind: output, shape index: {}]  }
   0x1   :  { %8 = vsyncpa [#allocation7], 0 }
   0x2   :  { %9 = vsyncpa [#allocation5], 0  ;;  %s2512_s9 = smov [#allocation3]  }
   0x3   :  { %s15_s10 = sshll.u32 %s2512_s9, 4  ;;  %s16_s10 = int_to_ptr.vmem [resolvable:$true] %s15_s10 }
   0x4   :  { %s2454_s11 = scalar_lea.vmem %s16_s10, 16384  ;;  %p2459_p1 = scmp.lt.s32.totalorder %s16_s10, %s16_s10 }
   0x5   :  { %p2455_p0 = scmp.ne.s32.totalorder %s16_s10, %s2454_s11  ;;  %p2460_p2 = scmp.lt.s32.totalorder %s2454_s11, %s2454_s11 }
   0x7   :  { %p2461_p3 = por %p2460_p2, %p2459_p1 }
   0x9   :  { %p2462_p4 = pnand %p2461_p3, %p2455_p0 }
   0xb   :  { %2465 = shalt.err (!%p2462_p4)
}
   0xc   :  { %s2513_s12 = smov 256   ;;  %s2514_s13 = smov 16  }
   0xd   :  { %21 = dma.hbm_to_vmem [thread:$0]  %s2578_s0, 16384, %s16_s10, [#allocation4], %s2513_s12, %s2513_s12, %s2514_s13  }
   0xe   :  { %s2515_s16 = smov [#allocation6]  }
   0xf   :  { %s27_s17 = sshll.u32 %s2515_s16, 4  ;;  %s28_s17 = int_to_ptr.vmem [resolvable:$true] %s27_s17 }
  0x10   :  { %s2474_s18 = scalar_lea.vmem %s28_s17, 4096  ;;  %p2479_p6 = scmp.lt.s32.totalorder %s28_s17, %s28_s17 }
  0x11   :  { %p2475_p5 = scmp.ne.s32.totalorder %s28_s17, %s2474_s18  ;;  %p2480_p7 = scmp.lt.s32.totalorder %s2474_s18, %s2474_s18 }
  0x13   :  { %p2481_p8 = por %p2480_p7, %p2479_p6 }
  0x15   :  { %p2482_p9 = pnand %p2481_p8, %p2475_p5 }
  0x17   :  { %2485 = shalt.err (!%p2482_p9)
}
  0x18   :  { %s2516_s19 = smov 64   ;;  %s2517_s20 = smov 4  }
  0x19   :  { %33 = dma.hbm_to_vmem [thread:$0]  %s2579_s1, 4096, %s28_s17, [#allocation7], %s2516_s19, %s2516_s19, %s2517_s20  }
  0x1a   :  { %2506 = dma.done.wait [#allocation4], 16384  }
  0x1b   :  { %2507 = vsyncadd [#allocation4], 4294950912 }
  0x1c   :  { %2508 = dma.done.wait [#allocation7], 4096  }
  0x1d   :  { %2509 = vsyncadd [#allocation7], 4294963200  ;;  %v2518_v0 = vmov 0   ;;  %v2222_v1 = vld [vmem:[#allocation6 + $0x38] sm:$0xff]   ;;  %v2224_v3 = vld [vmem:[#allocation6 + $0x30] sm:$0xff]   ;;  %s2519_s0 = smov [#allocation8]  }
  0x1e   :  { %1197 = vmatprep.subr.bf16.mxu0 %v2518_v0  ;;  %1486 = vmatprep.subr.bf16.mxu1 %v2518_v0  ;;  %v2223_v2 = vld [vmem:[#allocation6 + $0xb8] sm:$0xff]   ;;  %v2225_v4 = vld [vmem:[#allocation6 + $0xb0] sm:$0xff]   ;;  %v2226_v5 = vld [vmem:[#allocation6 + $0x28] sm:$0xff]   ;;  %s2039_s1 = sshll.u32 %s2519_s0, 4  ;;  %s2040_s1 = int_to_ptr.vmem [resolvable:$true] %s2039_s1 }
  0x1f   :  { %1198 = vmatpush1.bf16.msra.mxu0 %v2222_v1  ;;  %1487 = vmatpush1.bf16.msra.mxu1 %v2223_v2  ;;  %v2227_v6 = vld [vmem:[#allocation6 + $0xa8] sm:$0xff]   ;;  %v2228_v7 = vld [vmem:[#allocation6 + $0x20] sm:$0xff]   ;;  %v2230_v9 = vld [vmem:[#allocation6 + $0x18] sm:$0xff]   ;;  %s2486_s23 = scalar_lea.vmem %s2040_s1, 8192  ;;  %p2491_p11 = scmp.lt.s32.totalorder %s2040_s1, %s2040_s1 }
  0x20   :  { %1199 = vmatprep.subr.bf16.mxu0 %v2518_v0  ;;  %1488 = vmatprep.subr.bf16.mxu1 %v2518_v0  ;;  %v2229_v8 = vld [vmem:[#allocation6 + $0xa0] sm:$0xff]   ;;  %v2231_v10 = vld [vmem:[#allocation6 + $0x98] sm:$0xff]   ;;  %v2232_v11 = vld [vmem:[#allocation6 + $0x10] sm:$0xff]   ;;  %p2487_p10 = scmp.ne.s32.totalorder %s2040_s1, %s2486_s23  ;;  %p2492_p12 = scmp.lt.s32.totalorder %s2486_s23, %s2486_s23 }
  0x21   :  { %v2233_v12 = vld [vmem:[#allocation6 + $0x90] sm:$0xff]   ;;  %v2234_v13 = vld [vmem:[#allocation6 + $0x8] sm:$0xff]   ;;  %v2236_v15 = vld [vmem:[#allocation6] sm:$0xff]  }
  0x22   :  { %v2235_v14 = vld [vmem:[#allocation6 + $0x88] sm:$0xff]   ;;  %v2237_v16 = vld [vmem:[#allocation6 + $0x80] sm:$0xff]   ;;  %v2238_v17 = vld [vmem:[#allocation6 + $0x78] sm:$0xff]   ;;  %p2493_p13 = por %p2492_p12, %p2491_p11 }
  0x23   :  { %1200 = vmatpush1.bf16.msra.mxu0 %v2224_v3  ;;  %1489 = vmatpush1.bf16.msra.mxu1 %v2225_v4  ;;  %v2239_v18 = vld [vmem:[#allocation6 + $0xf8] sm:$0xff]   ;;  %v2256_v19 = vld [vmem:[#allocation3 + $0x4] ss:$16 sps:$4 sm:$0xff]   ;;  %v2242_v23 = vld [vmem:[#allocation6 + $0x68] sm:$0xff]  }
  0x24   :  { %1201 = vmatprep.subr.bf16.mxu0 %v2518_v0  ;;  %1490 = vmatprep.subr.bf16.mxu1 %v2518_v0  ;;  %v2240_v20 = vld [vmem:[#allocation6 + $0x70] sm:$0xff]   ;;  %v2259_v21 = vld [vmem:[#allocation3 + $0xc] ss:$16 sps:$4 sm:$0xff]   ;;  %v2244_v25 = vld [vmem:[#allocation6 + $0x60] sm:$0xff]   ;;  %p2494_p0 = pnand %p2493_p13, %p2487_p10 }
  0x25   :  { %v2241_v22 = vld [vmem:[#allocation6 + $0xf0] sm:$0xff]   ;;  %1229 = vmatprep.mubr.bf16.mxu0 %v2256_v19  ;;  %1518 = vmatprep.mubr.bf16.mxu1 %v2259_v21  ;;  %v2243_v24 = vld [vmem:[#allocation6 + $0xe8] sm:$0xff]   ;;  %v2245_v26 = vld [vmem:[#allocation6 + $0xe0] sm:$0xff]  }
  0x26   :  { %v2246_v27 = vld [vmem:[#allocation6 + $0x58] sm:$0xff]   ;;  %v2248_v29 = vld [vmem:[#allocation6 + $0x50] sm:$0xff]   ;;  %v2250_v31 = vld [vmem:[#allocation6 + $0x48] sm:$0xff]  }
  0x27   :  { %1202 = vmatpush1.bf16.msra.mxu0 %v2226_v5  ;;  %1491 = vmatpush1.bf16.msra.mxu1 %v2227_v6  ;;  %v2247_v28 = vld [vmem:[#allocation6 + $0xd8] sm:$0xff]   ;;  %v2249_v30 = vld [vmem:[#allocation6 + $0xd0] sm:$0xff]   ;;  %v2251_v32 = vld [vmem:[#allocation6 + $0xc8] sm:$0xff]  }
  0x28   :  { %1203 = vmatprep.subr.bf16.mxu0 %v2518_v0  ;;  %1492 = vmatprep.subr.bf16.mxu1 %v2518_v0  ;;  %v2252_v33 = vld [vmem:[#allocation6 + $0x40] sm:$0xff]   ;;  %v2257_v36 = vld [vmem:[#allocation3 + $0x8] ss:$16 sps:$4 sm:$0xff]   ;;  %v2262_v38 = vld [vmem:[#allocation3 + $0x2c] ss:$16 sps:$4 sm:$0xff]  }
  0x29   :  { %v2253_v34 = vld [vmem:[#allocation6 + $0xc0] sm:$0xff]   ;;  %v2265_v40 = vld [vmem:[#allocation3 + $0x28] ss:$16 sps:$4 sm:$0xff]   ;;  %v2268_v42 = vld [vmem:[#allocation3 + $0x4c] ss:$16 sps:$4 sm:$0xff]  }
  0x2a   :  { %v2254_v35 = vld [vmem:[#allocation3] ss:$16 sps:$4 sm:$0xff]   ;;  %v2260_v37 = vld [vmem:[#allocation3 + $0x24] ss:$16 sps:$4 sm:$0xff]   ;;  %v2271_v44 = vld [vmem:[#allocation3 + $0x48] ss:$16 sps:$4 sm:$0xff]  }
  0x2b   :  { %1204 = vmatpush1.bf16.msra.mxu0 %v2228_v7  ;;  %1493 = vmatpush1.bf16.msra.mxu1 %v2229_v8  ;;  %v2264_v39 = vld [vmem:[#allocation3 + $0x20] ss:$16 sps:$4 sm:$0xff]   ;;  %v2266_v41 = vld [vmem:[#allocation3 + $0x44] ss:$16 sps:$4 sm:$0xff]   ;;  %v2274_v46 = vld [vmem:[#allocation3 + $0x6c] ss:$16 sps:$4 sm:$0xff]  }
  0x2c   :  { %1205 = vmatprep.subr.bf16.mxu0 %v2518_v0  ;;  %1494 = vmatprep.subr.bf16.mxu1 %v2518_v0  ;;  %v2270_v43 = vld [vmem:[#allocation3 + $0x40] ss:$16 sps:$4 sm:$0xff]   ;;  %v2272_v45 = vld [vmem:[#allocation3 + $0x64] ss:$16 sps:$4 sm:$0xff]   ;;  %v2277_v48 = vld [vmem:[#allocation3 + $0x68] ss:$16 sps:$4 sm:$0xff]  }
  0x2d   :  { %v2276_v47 = vld [vmem:[#allocation3 + $0x60] ss:$16 sps:$4 sm:$0xff]   ;;  %v2278_v49 = vld [vmem:[#allocation3 + $0x84] ss:$16 sps:$4 sm:$0xff]   ;;  %v2280_v50 = vld [vmem:[#allocation3 + $0x8c] ss:$16 sps:$4 sm:$0xff]  }
  0x2e   :  { %v2282_v51 = vld [vmem:[#allocation3 + $0x80] ss:$16 sps:$4 sm:$0xff]   ;;  %v2283_v52 = vld [vmem:[#allocation3 + $0x88] ss:$16 sps:$4 sm:$0xff]   ;;  %v2284_v53 = vld [vmem:[#allocation3 + $0xa4] ss:$16 sps:$4 sm:$0xff]  }
  0x2f   :  { %1206 = vmatpush1.bf16.msra.mxu0 %v2230_v9  ;;  %1495 = vmatpush1.bf16.msra.mxu1 %v2231_v10  ;;  %v2286_v54 = vld [vmem:[#allocation3 + $0xac] ss:$16 sps:$4 sm:$0xff]   ;;  %v2288_v55 = vld [vmem:[#allocation3 + $0xa0] ss:$16 sps:$4 sm:$0xff]   ;;  %v2289_v56 = vld [vmem:[#allocation3 + $0xa8] ss:$16 sps:$4 sm:$0xff]  }
  0x30   :  { %1207 = vmatprep.subr.bf16.mxu0 %v2518_v0  ;;  %1496 = vmatprep.subr.bf16.mxu1 %v2518_v0  ;;  %v2290_v57 = vld [vmem:[#allocation3 + $0xc4] ss:$16 sps:$4 sm:$0xff]   ;;  %v2292_v58 = vld [vmem:[#allocation3 + $0xcc] ss:$16 sps:$4 sm:$0xff]   ;;  %v2294_v59 = vld [vmem:[#allocation3 + $0xc0] ss:$16 sps:$4 sm:$0xff]  }
  0x31   :  { %v2295_v60 = vld [vmem:[#allocation3 + $0xc8] ss:$16 sps:$4 sm:$0xff]   ;;  %v2296_v61 = vld [vmem:[#allocation3 + $0xe4] ss:$16 sps:$4 sm:$0xff]   ;;  %v2298_v62 = vld [vmem:[#allocation3 + $0xec] ss:$16 sps:$4 sm:$0xff]  }
  0x32   :  { %v2300_v63 = vld [vmem:[#allocation3 + $0xe0] ss:$16 sps:$4 sm:$0xff]   ;;  %v2302_v1 = vld [vmem:[#allocation3 + $0x104] ss:$16 sps:$4 sm:$0xff]   ;;  %v2304_v2 = vld [vmem:[#allocation3 + $0x10c] ss:$16 sps:$4 sm:$0xff]  }
  0x33   :  { %1208 = vmatpush1.bf16.msra.mxu0 %v2232_v11  ;;  %1497 = vmatpush1.bf16.msra.mxu1 %v2233_v12  ;;  %v2306_v3 = vld [vmem:[#allocation3 + $0x100] ss:$16 sps:$4 sm:$0xff]   ;;  %v2307_v4 = vld [vmem:[#allocation3 + $0x108] ss:$16 sps:$4 sm:$0xff]   ;;  %v2308_v5 = vld [vmem:[#allocation3 + $0x124] ss:$16 sps:$4 sm:$0xff]  }
  0x34   :  { %1209 = vmatprep.subr.bf16.mxu0 %v2518_v0  ;;  %1498 = vmatprep.subr.bf16.mxu1 %v2518_v0  ;;  %v2310_v6 = vld [vmem:[#allocation3 + $0x12c] ss:$16 sps:$4 sm:$0xff]   ;;  %v2312_v7 = vld [vmem:[#allocation3 + $0x120] ss:$16 sps:$4 sm:$0xff]   ;;  %v2313_v8 = vld [vmem:[#allocation3 + $0x128] ss:$16 sps:$4 sm:$0xff]  }
  0x35   :  { %v2314_v9 = vld [vmem:[#allocation3 + $0x144] ss:$16 sps:$4 sm:$0xff]   ;;  %v2316_v10 = vld [vmem:[#allocation3 + $0x14c] ss:$16 sps:$4 sm:$0xff]   ;;  %v2318_v11 = vld [vmem:[#allocation3 + $0x140] ss:$16 sps:$4 sm:$0xff]  }
  0x36   :  { %v2319_v12 = vld [vmem:[#allocation3 + $0x148] ss:$16 sps:$4 sm:$0xff]   ;;  %v2330_v19 = vld [vmem:[#allocation3 + $0x180] ss:$16 sps:$4 sm:$0xff]   ;;  %v2332_v21 = vld [vmem:[#allocation3 + $0x1a4] ss:$16 sps:$4 sm:$0xff]  }
  0x37   :  { %1210 = vmatpush1.bf16.msra.mxu0 %v2234_v13  ;;  %1499 = vmatpush1.bf16.msra.mxu1 %v2235_v14  ;;  %v2320_v13 = vld [vmem:[#allocation3 + $0x164] ss:$16 sps:$4 sm:$0xff]   ;;  %v2322_v14 = vld [vmem:[#allocation3 + $0x16c] ss:$16 sps:$4 sm:$0xff]  }
  0x38   :  { %1211 = vmatprep.subr.bf16.mxu0 %v2518_v0  ;;  %1500 = vmatprep.subr.bf16.mxu1 %v2518_v0 }
  0x3b   :  { %1212 = vmatpush1.bf16.msra.mxu0 %v2236_v15  ;;  %1501 = vmatpush1.bf16.msra.mxu1 %v2237_v16  ;;  %v2324_v15 = vld [vmem:[#allocation3 + $0x160] ss:$16 sps:$4 sm:$0xff]   ;;  %v2325_v16 = vld [vmem:[#allocation3 + $0x168] ss:$16 sps:$4 sm:$0xff]  }
  0x3c   :  { %1213 = vmatprep.subr.bf16.mxu0 %v2518_v0  ;;  %1502 = vmatprep.subr.bf16.mxu1 %v2518_v0 }
  0x3f   :  { %1214 = vmatpush2.bf16.msra.mxu0 %v2238_v17  ;;  %1503 = vmatpush2.bf16.msra.mxu1 %v2239_v18  ;;  %v2326_v17 = vld [vmem:[#allocation3 + $0x184] ss:$16 sps:$4 sm:$0xff]   ;;  %v2328_v18 = vld [vmem:[#allocation3 + $0x18c] ss:$16 sps:$4 sm:$0xff]  }
  0x40   :  { %1215 = vmatprep.subr.bf16.mxu0 %v2518_v0  ;;  %1504 = vmatprep.subr.bf16.mxu1 %v2518_v0 }
  0x43   :  { %1216 = vmatpush2.bf16.msra.mxu0 %v2240_v20  ;;  %1505 = vmatpush2.bf16.msra.mxu1 %v2241_v22  ;;  %v2331_v20 = vld [vmem:[#allocation3 + $0x188] ss:$16 sps:$4 sm:$0xff]   ;;  %v2334_v22 = vld [vmem:[#allocation3 + $0x1ac] ss:$16 sps:$4 sm:$0xff]  }
  0x44   :  { %1217 = vmatprep.subr.bf16.mxu0 %v2518_v0  ;;  %1506 = vmatprep.subr.bf16.mxu1 %v2518_v0 }
  0x47   :  { %1218 = vmatpush2.bf16.msra.mxu0 %v2242_v23  ;;  %1507 = vmatpush2.bf16.msra.mxu1 %v2243_v24  ;;  %v2336_v23 = vld [vmem:[#allocation3 + $0x1a0] ss:$16 sps:$4 sm:$0xff]   ;;  %v2337_v24 = vld [vmem:[#allocation3 + $0x1a8] ss:$16 sps:$4 sm:$0xff]  }
  0x48   :  { %1219 = vmatprep.subr.bf16.mxu0 %v2518_v0  ;;  %1508 = vmatprep.subr.bf16.mxu1 %v2518_v0 }
  0x4b   :  { %1220 = vmatpush2.bf16.msra.mxu0 %v2244_v25  ;;  %1509 = vmatpush2.bf16.msra.mxu1 %v2245_v26  ;;  %v2338_v25 = vld [vmem:[#allocation3 + $0x1c4] ss:$16 sps:$4 sm:$0xff]   ;;  %v2340_v26 = vld [vmem:[#allocation3 + $0x1cc] ss:$16 sps:$4 sm:$0xff]  }
  0x4c   :  { %1221 = vmatprep.subr.bf16.mxu0 %v2518_v0  ;;  %1510 = vmatprep.subr.bf16.mxu1 %v2518_v0 }
  0x4f   :  { %1222 = vmatpush2.bf16.msra.mxu0 %v2246_v27  ;;  %1511 = vmatpush2.bf16.msra.mxu1 %v2247_v28  ;;  %v2342_v27 = vld [vmem:[#allocation3 + $0x1c0] ss:$16 sps:$4 sm:$0xff]   ;;  %v2343_v28 = vld [vmem:[#allocation3 + $0x1c8] ss:$16 sps:$4 sm:$0xff]  }
  0x50   :  { %1223 = vmatprep.subr.bf16.mxu0 %v2518_v0  ;;  %1512 = vmatprep.subr.bf16.mxu1 %v2518_v0 }
  0x53   :  { %1224 = vmatpush2.bf16.msra.mxu0 %v2248_v29  ;;  %1513 = vmatpush2.bf16.msra.mxu1 %v2249_v30  ;;  %v2344_v29 = vld [vmem:[#allocation3 + $0x1e4] ss:$16 sps:$4 sm:$0xff]   ;;  %v2346_v30 = vld [vmem:[#allocation3 + $0x1ec] ss:$16 sps:$4 sm:$0xff]  }
  0x54   :  { %1225 = vmatprep.subr.bf16.mxu0 %v2518_v0  ;;  %1514 = vmatprep.subr.bf16.mxu1 %v2518_v0 }
  0x57   :  { %1226 = vmatpush2.bf16.msra.mxu0 %v2250_v31  ;;  %1515 = vmatpush2.bf16.msra.mxu1 %v2251_v32  ;;  %v2348_v31 = vld [vmem:[#allocation3 + $0x1e0] ss:$16 sps:$4 sm:$0xff]   ;;  %v2349_v32 = vld [vmem:[#allocation3 + $0x1e8] ss:$16 sps:$4 sm:$0xff]  }
  0x58   :  { %1227 = vmatprep.subr.bf16.mxu0 %v2518_v0  ;;  %1516 = vmatprep.subr.bf16.mxu1 %v2518_v0  ;;  %v2301_v0 = vld [vmem:[#allocation3 + $0xe8] ss:$16 sps:$4 sm:$0xff]  }
  0x5b   :  { %1228 = vmatpush2.bf16.msra.mxu0 %v2252_v33  ;;  %1517 = vmatpush2.bf16.msra.mxu1 %v2253_v34  ;;  %v2350_v33 = vld [vmem:[#allocation3 + $0x204] ss:$16 sps:$4 sm:$0xff]   ;;  %v2352_v34 = vld [vmem:[#allocation3 + $0x20c] ss:$16 sps:$4 sm:$0xff]  }
  0x5e   :  { %1230 = vmatmul.mubr.bf16.vlgmr.msra.gmra.mxu0 %v2254_v35  ;;  %1519 = vmatmul.mubr.bf16.vlgmr.msra.gmra.mxu1 %v2257_v36  ;;  %v2354_v35 = vld [vmem:[#allocation3 + $0x200] ss:$16 sps:$4 sm:$0xff]   ;;  %v2355_v36 = vld [vmem:[#allocation3 + $0x208] ss:$16 sps:$4 sm:$0xff]  }
  0x5f   :  { %1237 = vmatprep.mubr.bf16.mxu0 %v2260_v37  ;;  %1526 = vmatprep.mubr.bf16.mxu1 %v2262_v38  ;;  %v2356_v37 = vld [vmem:[#allocation3 + $0x224] ss:$16 sps:$4 sm:$0xff]   ;;  %v2358_v38 = vld [vmem:[#allocation3 + $0x22c] ss:$16 sps:$4 sm:$0xff]  }
  0x66   :  { %1238 = vmatmul.mubr.bf16.gmra.mxu0 %v2264_v39  ;;  %1527 = vmatmul.mubr.bf16.gmra.mxu1 %v2265_v40  ;;  %v2360_v39 = vld [vmem:[#allocation3 + $0x220] ss:$16 sps:$4 sm:$0xff]   ;;  %v2361_v40 = vld [vmem:[#allocation3 + $0x228] ss:$16 sps:$4 sm:$0xff]  }
  0x67   :  { %1245 = vmatprep.mubr.bf16.mxu0 %v2266_v41  ;;  %1534 = vmatprep.mubr.bf16.mxu1 %v2268_v42  ;;  %v2362_v41 = vld [vmem:[#allocation3 + $0x244] ss:$16 sps:$4 sm:$0xff]   ;;  %v2364_v42 = vld [vmem:[#allocation3 + $0x24c] ss:$16 sps:$4 sm:$0xff]  }
  0x6e   :  { %1246 = vmatmul.mubr.bf16.gmra.mxu0 %v2270_v43  ;;  %1535 = vmatmul.mubr.bf16.gmra.mxu1 %v2271_v44  ;;  %v2366_v43 = vld [vmem:[#allocation3 + $0x240] ss:$16 sps:$4 sm:$0xff]   ;;  %v2367_v44 = vld [vmem:[#allocation3 + $0x248] ss:$16 sps:$4 sm:$0xff]  }
  0x6f   :  { %1253 = vmatprep.mubr.bf16.mxu0 %v2272_v45  ;;  %1542 = vmatprep.mubr.bf16.mxu1 %v2274_v46  ;;  %v2368_v45 = vld [vmem:[#allocation3 + $0x264] ss:$16 sps:$4 sm:$0xff]   ;;  %v2370_v46 = vld [vmem:[#allocation3 + $0x26c] ss:$16 sps:$4 sm:$0xff]  }
  0x76   :  { %1254 = vmatmul.mubr.bf16.gmra.mxu0 %v2276_v47  ;;  %1543 = vmatmul.mubr.bf16.gmra.mxu1 %v2277_v48  ;;  %v2372_v47 = vld [vmem:[#allocation3 + $0x260] ss:$16 sps:$4 sm:$0xff]   ;;  %v2373_v48 = vld [vmem:[#allocation3 + $0x268] ss:$16 sps:$4 sm:$0xff]  }
  0x77   :  { %1261 = vmatprep.mubr.bf16.mxu0 %v2278_v49  ;;  %1550 = vmatprep.mubr.bf16.mxu1 %v2280_v50  ;;  %v2374_v49 = vld [vmem:[#allocation3 + $0x284] ss:$16 sps:$4 sm:$0xff]   ;;  %v2376_v50 = vld [vmem:[#allocation3 + $0x28c] ss:$16 sps:$4 sm:$0xff]  }
  0x7e   :  { %1262 = vmatmul.mubr.bf16.gmra.mxu0 %v2282_v51  ;;  %1551 = vmatmul.mubr.bf16.gmra.mxu1 %v2283_v52  ;;  %v2378_v51 = vld [vmem:[#allocation3 + $0x280] ss:$16 sps:$4 sm:$0xff]   ;;  %v2379_v52 = vld [vmem:[#allocation3 + $0x288] ss:$16 sps:$4 sm:$0xff]  }
  0x7f   :  { %1269 = vmatprep.mubr.bf16.mxu0 %v2284_v53  ;;  %1558 = vmatprep.mubr.bf16.mxu1 %v2286_v54  ;;  %v2380_v53 = vld [vmem:[#allocation3 + $0x2a4] ss:$16 sps:$4 sm:$0xff]   ;;  %v2382_v54 = vld [vmem:[#allocation3 + $0x2ac] ss:$16 sps:$4 sm:$0xff]  }
  0x86   :  { %1270 = vmatmul.mubr.bf16.gmra.mxu0 %v2288_v55  ;;  %1559 = vmatmul.mubr.bf16.gmra.mxu1 %v2289_v56  ;;  %v2384_v55 = vld [vmem:[#allocation3 + $0x2a0] ss:$16 sps:$4 sm:$0xff]   ;;  %v2385_v56 = vld [vmem:[#allocation3 + $0x2a8] ss:$16 sps:$4 sm:$0xff]  }
  0x87   :  { %1277 = vmatprep.mubr.bf16.mxu0 %v2290_v57  ;;  %1566 = vmatprep.mubr.bf16.mxu1 %v2292_v58  ;;  %v2386_v57 = vld [vmem:[#allocation3 + $0x2c4] ss:$16 sps:$4 sm:$0xff]   ;;  %v2388_v58 = vld [vmem:[#allocation3 + $0x2cc] ss:$16 sps:$4 sm:$0xff]  }
  0x8e   :  { %1278 = vmatmul.mubr.bf16.gmra.mxu0 %v2294_v59  ;;  %1567 = vmatmul.mubr.bf16.gmra.mxu1 %v2295_v60  ;;  %v2390_v59 = vld [vmem:[#allocation3 + $0x2c0] ss:$16 sps:$4 sm:$0xff]   ;;  %v2391_v60 = vld [vmem:[#allocation3 + $0x2c8] ss:$16 sps:$4 sm:$0xff]  }
  0x8f   :  { %1285 = vmatprep.mubr.bf16.mxu0 %v2296_v61  ;;  %1574 = vmatprep.mubr.bf16.mxu1 %v2298_v62  ;;  %v2392_v61 = vld [vmem:[#allocation3 + $0x2e4] ss:$16 sps:$4 sm:$0xff]   ;;  %v2394_v62 = vld [vmem:[#allocation3 + $0x2ec] ss:$16 sps:$4 sm:$0xff]  }
  0x96   :  { %1286 = vmatmul.mubr.bf16.gmra.mxu0 %v2300_v63  ;;  %1575 = vmatmul.mubr.bf16.gmra.mxu1 %v2301_v0  ;;  %v2396_v63 = vld [vmem:[#allocation3 + $0x2e0] ss:$16 sps:$4 sm:$0xff]   ;;  %v2397_v0 = vld [vmem:[#allocation3 + $0x2e8] ss:$16 sps:$4 sm:$0xff]  }
  0x97   :  { %1293 = vmatprep.mubr.bf16.mxu0 %v2302_v1  ;;  %1582 = vmatprep.mubr.bf16.mxu1 %v2304_v2  ;;  %v2398_v1 = vld [vmem:[#allocation3 + $0x304] ss:$16 sps:$4 sm:$0xff]   ;;  %v2400_v2 = vld [vmem:[#allocation3 + $0x30c] ss:$16 sps:$4 sm:$0xff]  }
  0x9e   :  { %1294 = vmatmul.mubr.bf16.gmra.mxu0 %v2306_v3  ;;  %1583 = vmatmul.mubr.bf16.gmra.mxu1 %v2307_v4  ;;  %v2402_v3 = vld [vmem:[#allocation3 + $0x300] ss:$16 sps:$4 sm:$0xff]   ;;  %v2403_v4 = vld [vmem:[#allocation3 + $0x308] ss:$16 sps:$4 sm:$0xff]  }
  0x9f   :  { %1301 = vmatprep.mubr.bf16.mxu0 %v2308_v5  ;;  %1590 = vmatprep.mubr.bf16.mxu1 %v2310_v6  ;;  %v2404_v5 = vld [vmem:[#allocation3 + $0x324] ss:$16 sps:$4 sm:$0xff]   ;;  %v2406_v6 = vld [vmem:[#allocation3 + $0x32c] ss:$16 sps:$4 sm:$0xff]  }
  0xa6   :  { %1302 = vmatmul.mubr.bf16.gmra.mxu0 %v2312_v7  ;;  %1591 = vmatmul.mubr.bf16.gmra.mxu1 %v2313_v8 }
  0xa7   :  { %1309 = vmatprep.mubr.bf16.mxu0 %v2314_v9  ;;  %1598 = vmatprep.mubr.bf16.mxu1 %v2316_v10 }
  0xae   :  { %1310 = vmatmul.mubr.bf16.gmra.mxu0 %v2318_v11  ;;  %1599 = vmatmul.mubr.bf16.gmra.mxu1 %v2319_v12 }
  0xaf   :  { %1317 = vmatprep.mubr.bf16.mxu0 %v2320_v13  ;;  %1606 = vmatprep.mubr.bf16.mxu1 %v2322_v14  ;;  %v2408_v13 = vld [vmem:[#allocation3 + $0x320] ss:$16 sps:$4 sm:$0xff]  }
  0xb6   :  { %1318 = vmatmul.mubr.bf16.gmra.mxu0 %v2324_v15  ;;  %1607 = vmatmul.mubr.bf16.gmra.mxu1 %v2325_v16  ;;  %v2409_v15 = vld [vmem:[#allocation3 + $0x328] ss:$16 sps:$4 sm:$0xff]   ;;  %v2410_v16 = vld [vmem:[#allocation3 + $0x344] ss:$16 sps:$4 sm:$0xff]  }
  0xb7   :  { %1325 = vmatprep.mubr.bf16.mxu0 %v2326_v17  ;;  %1614 = vmatprep.mubr.bf16.mxu1 %v2328_v18 }
  0xbe   :  { %1326 = vmatmul.mubr.bf16.gmra.mxu0 %v2330_v19  ;;  %1615 = vmatmul.mubr.bf16.gmra.mxu1 %v2331_v20  ;;  %v2412_v19 = vld [vmem:[#allocation3 + $0x34c] ss:$16 sps:$4 sm:$0xff]  }
  0xbf   :  { %1333 = vmatprep.mubr.bf16.mxu0 %v2332_v21  ;;  %1622 = vmatprep.mubr.bf16.mxu1 %v2334_v22 }
  0xc6   :  { %1334 = vmatmul.mubr.bf16.gmra.mxu0 %v2336_v23  ;;  %1623 = vmatmul.mubr.bf16.gmra.mxu1 %v2337_v24 }
  0xc7   :  { %1341 = vmatprep.mubr.bf16.mxu0 %v2338_v25  ;;  %1630 = vmatprep.mubr.bf16.mxu1 %v2340_v26 }
  0xce   :  { %1342 = vmatmul.mubr.bf16.gmra.mxu0 %v2342_v27  ;;  %1631 = vmatmul.mubr.bf16.gmra.mxu1 %v2343_v28  ;;  %v2414_v27 = vld [vmem:[#allocation3 + $0x340] ss:$16 sps:$4 sm:$0xff]  }
  0xcf   :  { %1349 = vmatprep.mubr.bf16.mxu0 %v2344_v29  ;;  %1638 = vmatprep.mubr.bf16.mxu1 %v2346_v30  ;;  %v2415_v29 = vld [vmem:[#allocation3 + $0x348] ss:$16 sps:$4 sm:$0xff]   ;;  %v2416_v30 = vld [vmem:[#allocation3 + $0x364] ss:$16 sps:$4 sm:$0xff]  }
  0xd6   :  { %1350 = vmatmul.mubr.bf16.gmra.mxu0 %v2348_v31  ;;  %1639 = vmatmul.mubr.bf16.gmra.mxu1 %v2349_v32 }
  0xd7   :  { %1357 = vmatprep.mubr.bf16.mxu0 %v2350_v33  ;;  %1646 = vmatprep.mubr.bf16.mxu1 %v2352_v34  ;;  %v2418_v33 = vld [vmem:[#allocation3 + $0x36c] ss:$16 sps:$4 sm:$0xff]  }
  0xde   :  { %1358 = vmatmul.mubr.bf16.gmra.mxu0 %v2354_v35  ;;  %1647 = vmatmul.mubr.bf16.gmra.mxu1 %v2355_v36 }
  0xdf   :  { %1365 = vmatprep.mubr.bf16.mxu0 %v2356_v37  ;;  %1654 = vmatprep.mubr.bf16.mxu1 %v2358_v38 }
  0xe6   :  { %1366 = vmatmul.mubr.bf16.gmra.mxu0 %v2360_v39  ;;  %1655 = vmatmul.mubr.bf16.gmra.mxu1 %v2361_v40 }
  0xe7   :  { %1373 = vmatprep.mubr.bf16.mxu0 %v2362_v41  ;;  %1662 = vmatprep.mubr.bf16.mxu1 %v2364_v42  ;;  %v2420_v41 = vld [vmem:[#allocation3 + $0x360] ss:$16 sps:$4 sm:$0xff]  }
  0xee   :  { %1374 = vmatmul.mubr.bf16.gmra.mxu0 %v2366_v43  ;;  %1663 = vmatmul.mubr.bf16.gmra.mxu1 %v2367_v44  ;;  %v2421_v43 = vld [vmem:[#allocation3 + $0x368] ss:$16 sps:$4 sm:$0xff]   ;;  %v2424_v44 = vld [vmem:[#allocation3 + $0x384] ss:$16 sps:$4 sm:$0xff]  }
  0xef   :  { %1381 = vmatprep.mubr.bf16.mxu0 %v2368_v45  ;;  %1670 = vmatprep.mubr.bf16.mxu1 %v2370_v46 }
  0xf6   :  { %1382 = vmatmul.mubr.bf16.gmra.mxu0 %v2372_v47  ;;  %1671 = vmatmul.mubr.bf16.gmra.mxu1 %v2373_v48  ;;  %v2427_v47 = vld [vmem:[#allocation3 + $0x38c] ss:$16 sps:$4 sm:$0xff]  }
  0xf7   :  { %1389 = vmatprep.mubr.bf16.mxu0 %v2374_v49  ;;  %1678 = vmatprep.mubr.bf16.mxu1 %v2376_v50 }
  0xfe   :  { %1390 = vmatmul.mubr.bf16.gmra.mxu0 %v2378_v51  ;;  %1679 = vmatmul.mubr.bf16.gmra.mxu1 %v2379_v52 }
  0xff   :  { %1397 = vmatprep.mubr.bf16.mxu0 %v2380_v53  ;;  %1686 = vmatprep.mubr.bf16.mxu1 %v2382_v54 }
 0x106   :  { %1398 = vmatmul.mubr.bf16.gmra.mxu0 %v2384_v55  ;;  %1687 = vmatmul.mubr.bf16.gmra.mxu1 %v2385_v56  ;;  %v2422_v55 = vld [vmem:[#allocation3 + $0x380] ss:$16 sps:$4 sm:$0xff]  }
 0x107   :  { %1405 = vmatprep.mubr.bf16.mxu0 %v2386_v57  ;;  %1694 = vmatprep.mubr.bf16.mxu1 %v2388_v58  ;;  %v2425_v57 = vld [vmem:[#allocation3 + $0x388] ss:$16 sps:$4 sm:$0xff]   ;;  %v2430_v58 = vld [vmem:[#allocation3 + $0x3a4] ss:$16 sps:$4 sm:$0xff]  }
 0x10e   :  { %1406 = vmatmul.mubr.bf16.gmra.mxu0 %v2390_v59  ;;  %1695 = vmatmul.mubr.bf16.gmra.mxu1 %v2391_v60 }
 0x10f   :  { %1413 = vmatprep.mubr.bf16.mxu0 %v2392_v61  ;;  %1702 = vmatprep.mubr.bf16.mxu1 %v2394_v62  ;;  %v2433_v61 = vld [vmem:[#allocation3 + $0x3ac] ss:$16 sps:$4 sm:$0xff]  }
 0x116   :  { %1414 = vmatmul.mubr.bf16.gmra.mxu0 %v2396_v63  ;;  %1703 = vmatmul.mubr.bf16.gmra.mxu1 %v2397_v0 }
 0x117   :  { %1421 = vmatprep.mubr.bf16.mxu0 %v2398_v1  ;;  %1710 = vmatprep.mubr.bf16.mxu1 %v2400_v2 }
 0x11e   :  { %v1231_v7 = vpop.f32.mrf.mxu0  ;;  %1422 = vmatmul.mubr.bf16.gmra.mxu0 %v2402_v3  ;;  %v1520_v8 = vpop.f32.mrf.mxu1  ;;  %1711 = vmatmul.mubr.bf16.gmra.mxu1 %v2403_v4 }
 0x11f   :  { %1429 = vmatprep.mubr.bf16.mxu0 %v2404_v5  ;;  %v1521_v9 = vadd.f32 %v1520_v8, %v1231_v7  ;;  %1718 = vmatprep.mubr.bf16.mxu1 %v2406_v6  ;;  %v2428_v5 = vld [vmem:[#allocation3 + $0x3a0] ss:$16 sps:$4 sm:$0xff]   ;;  %v2431_v7 = vld [vmem:[#allocation3 + $0x3a8] ss:$16 sps:$4 sm:$0xff]   ;;  %v2436_v8 = vld [vmem:[#allocation3 + $0x3c4] ss:$16 sps:$4 sm:$0xff]  }
 0x120   :  { %v1233_v10 = vpop.f32.mrf.mxu0  ;;  %v1522_v11 = vpop.f32.mrf.mxu1 }
 0x121   :  { %1970 = vst [vmem:[#allocation8] sm:$0xff] %v1521_v9  ;;  %v2439_v11 = vld [vmem:[#allocation3 + $0x3cc] ss:$16 sps:$4 sm:$0xff]  }
 0x122   :  { %v1234_v12 = vpop.f32.mrf.mxu0  ;;  %v1523_v14 = vpop.f32.mrf.mxu1 }
 0x123   :  { %v1524_v17 = vadd.f32 %v1523_v14, %v1234_v12 }
 0x124   :  { %v1236_v18 = vpop.f32.mrf.mxu0  ;;  %v1525_v20 = vpop.f32.mrf.mxu1 }
 0x125   :  { %1971 = vst [vmem:[#allocation8 + $0x8] sm:$0xff] %v1524_v17 }
 0x126   :  { %v1239_v21 = vpop.f32.mrf.mxu0  ;;  %1430 = vmatmul.mubr.bf16.gmra.mxu0 %v2408_v13  ;;  %v1528_v22 = vpop.f32.mrf.mxu1  ;;  %1719 = vmatmul.mubr.bf16.gmra.mxu1 %v2409_v15 }
 0x127   :  { %1437 = vmatprep.mubr.bf16.mxu0 %v2410_v16  ;;  %v1529_v23 = vadd.f32 %v1528_v22, %v1239_v21  ;;  %1726 = vmatprep.mubr.bf16.mxu1 %v2412_v19  ;;  %v2434_v19 = vld [vmem:[#allocation3 + $0x3c0] ss:$16 sps:$4 sm:$0xff]   ;;  %v2437_v21 = vld [vmem:[#allocation3 + $0x3c8] ss:$16 sps:$4 sm:$0xff]   ;;  %v2442_v22 = vld [vmem:[#allocation3 + $0x3e4] ss:$16 sps:$4 sm:$0xff]  }
 0x128   :  { %v1241_v24 = vpop.f32.mrf.mxu0  ;;  %v1530_v25 = vpop.f32.mrf.mxu1 }
 0x129   :  { %1972 = vst [vmem:[#allocation8 + $0x10] sm:$0xff] %v1529_v23  ;;  %v2445_v25 = vld [vmem:[#allocation3 + $0x3ec] ss:$16 sps:$4 sm:$0xff]  }
 0x12a   :  { %v1242_v26 = vpop.f32.mrf.mxu0  ;;  %v1531_v28 = vpop.f32.mrf.mxu1 }
 0x12b   :  { %v1532_v31 = vadd.f32 %v1531_v28, %v1242_v26 }
 0x12c   :  { %v1244_v32 = vpop.f32.mrf.mxu0  ;;  %v1533_v34 = vpop.f32.mrf.mxu1 }
 0x12d   :  { %1973 = vst [vmem:[#allocation8 + $0x18] sm:$0xff] %v1532_v31 }
 0x12e   :  { %v1247_v35 = vpop.f32.mrf.mxu0  ;;  %1438 = vmatmul.mubr.bf16.gmra.mxu0 %v2414_v27  ;;  %v1536_v36 = vpop.f32.mrf.mxu1  ;;  %1727 = vmatmul.mubr.bf16.gmra.mxu1 %v2415_v29 }
 0x12f   :  { %1445 = vmatprep.mubr.bf16.mxu0 %v2416_v30  ;;  %v1537_v37 = vadd.f32 %v1536_v36, %v1247_v35  ;;  %1734 = vmatprep.mubr.bf16.mxu1 %v2418_v33  ;;  %v2440_v33 = vld [vmem:[#allocation3 + $0x3e0] ss:$16 sps:$4 sm:$0xff]   ;;  %v2443_v35 = vld [vmem:[#allocation3 + $0x3e8] ss:$16 sps:$4 sm:$0xff]  }
 0x130   :  { %v1249_v38 = vpop.f32.mrf.mxu0  ;;  %v1538_v39 = vpop.f32.mrf.mxu1 }
 0x131   :  { %1974 = vst [vmem:[#allocation8 + $0x20] sm:$0xff] %v1537_v37 }
 0x132   :  { %v1250_v40 = vpop.f32.mrf.mxu0  ;;  %v1539_v42 = vpop.f32.mrf.mxu1 }
 0x133   :  { %v1540_v45 = vadd.f32 %v1539_v42, %v1250_v40 }
 0x134   :  { %v1252_v46 = vpop.f32.mrf.mxu0  ;;  %v1541_v48 = vpop.f32.mrf.mxu1 }
 0x135   :  { %1975 = vst [vmem:[#allocation8 + $0x28] sm:$0xff] %v1540_v45 }
 0x136   :  { %v1255_v49 = vpop.f32.mrf.mxu0  ;;  %1446 = vmatmul.mubr.bf16.gmra.mxu0 %v2420_v41  ;;  %v1544_v50 = vpop.f32.mrf.mxu1  ;;  %1735 = vmatmul.mubr.bf16.gmra.mxu1 %v2421_v43 }
 0x137   :  { %1453 = vmatprep.mubr.bf16.mxu0 %v2424_v44  ;;  %v1545_v51 = vadd.f32 %v1544_v50, %v1255_v49  ;;  %1742 = vmatprep.mubr.bf16.mxu1 %v2427_v47 }
 0x138   :  { %v1257_v52 = vpop.f32.mrf.mxu0  ;;  %v1546_v53 = vpop.f32.mrf.mxu1 }
 0x139   :  { %1976 = vst [vmem:[#allocation8 + $0x30] sm:$0xff] %v1545_v51 }
 0x13a   :  { %v1258_v54 = vpop.f32.mrf.mxu0  ;;  %v1547_v56 = vpop.f32.mrf.mxu1 }
 0x13b   :  { %v1548_v59 = vadd.f32 %v1547_v56, %v1258_v54 }
 0x13c   :  { %v1260_v60 = vpop.f32.mrf.mxu0  ;;  %v1549_v62 = vpop.f32.mrf.mxu1 }
 0x13d   :  { %1977 = vst [vmem:[#allocation8 + $0x38] sm:$0xff] %v1548_v59 }
 0x13e   :  { %v1263_v63 = vpop.f32.mrf.mxu0  ;;  %1454 = vmatmul.mubr.bf16.gmra.mxu0 %v2422_v55  ;;  %v1552_v0 = vpop.f32.mrf.mxu1  ;;  %1743 = vmatmul.mubr.bf16.gmra.mxu1 %v2425_v57 }
 0x13f   :  { %1461 = vmatprep.mubr.bf16.mxu0 %v2430_v58  ;;  %v1553_v1 = vadd.f32 %v1552_v0, %v1263_v63  ;;  %1750 = vmatprep.mubr.bf16.mxu1 %v2433_v61 }
 0x140   :  { %v1265_v2 = vpop.f32.mrf.mxu0  ;;  %v1554_v3 = vpop.f32.mrf.mxu1 }
 0x141   :  { %1978 = vst [vmem:[#allocation8 + $0x40] sm:$0xff] %v1553_v1 }
 0x142   :  { %v1266_v4 = vpop.f32.mrf.mxu0  ;;  %v1555_v6 = vpop.f32.mrf.mxu1 }
 0x143   :  { %v1556_v9 = vadd.f32 %v1555_v6, %v1266_v4 }
 0x144   :  { %v1268_v10 = vpop.f32.mrf.mxu0  ;;  %v1557_v12 = vpop.f32.mrf.mxu1 }
 0x145   :  { %1979 = vst [vmem:[#allocation8 + $0x48] sm:$0xff] %v1556_v9 }
 0x146   :  { %v1271_v13 = vpop.f32.mrf.mxu0  ;;  %1462 = vmatmul.mubr.bf16.gmra.mxu0 %v2428_v5  ;;  %v1560_v14 = vpop.f32.mrf.mxu1  ;;  %1751 = vmatmul.mubr.bf16.gmra.mxu1 %v2431_v7 }
 0x147   :  { %1469 = vmatprep.mubr.bf16.mxu0 %v2436_v8  ;;  %v1561_v15 = vadd.f32 %v1560_v14, %v1271_v13  ;;  %1758 = vmatprep.mubr.bf16.mxu1 %v2439_v11 }
 0x148   :  { %v1273_v16 = vpop.f32.mrf.mxu0  ;;  %v1562_v17 = vpop.f32.mrf.mxu1 }
 0x149   :  { %1980 = vst [vmem:[#allocation8 + $0x50] sm:$0xff] %v1561_v15 }
 0x14a   :  { %v1274_v18 = vpop.f32.mrf.mxu0  ;;  %v1563_v20 = vpop.f32.mrf.mxu1 }
 0x14b   :  { %v1564_v23 = vadd.f32 %v1563_v20, %v1274_v18 }
 0x14c   :  { %v1276_v24 = vpop.f32.mrf.mxu0  ;;  %v1565_v26 = vpop.f32.mrf.mxu1 }
 0x14d   :  { %1981 = vst [vmem:[#allocation8 + $0x58] sm:$0xff] %v1564_v23 }
 0x14e   :  { %v1279_v27 = vpop.f32.mrf.mxu0  ;;  %1470 = vmatmul.mubr.bf16.gmra.mxu0 %v2434_v19  ;;  %v1568_v28 = vpop.f32.mrf.mxu1  ;;  %1759 = vmatmul.mubr.bf16.gmra.mxu1 %v2437_v21 }
 0x14f   :  { %1477 = vmatprep.mubr.bf16.mxu0 %v2442_v22  ;;  %v1569_v29 = vadd.f32 %v1568_v28, %v1279_v27  ;;  %1766 = vmatprep.mubr.bf16.mxu1 %v2445_v25 }
 0x150   :  { %v1281_v30 = vpop.f32.mrf.mxu0  ;;  %v1570_v31 = vpop.f32.mrf.mxu1 }
 0x151   :  { %1982 = vst [vmem:[#allocation8 + $0x60] sm:$0xff] %v1569_v29 }
 0x152   :  { %v1282_v32 = vpop.f32.mrf.mxu0  ;;  %v1571_v34 = vpop.f32.mrf.mxu1 }
 0x153   :  { %v1572_v36 = vadd.f32 %v1571_v34, %v1282_v32 }
 0x154   :  { %v1284_v37 = vpop.f32.mrf.mxu0  ;;  %v1573_v38 = vpop.f32.mrf.mxu1 }
 0x155   :  { %1983 = vst [vmem:[#allocation8 + $0x68] sm:$0xff] %v1572_v36 }
 0x156   :  { %v1287_v39 = vpop.f32.mrf.mxu0  ;;  %1478 = vmatmul.mubr.bf16.gmra.mxu0 %v2440_v33  ;;  %v1576_v40 = vpop.f32.mrf.mxu1  ;;  %1767 = vmatmul.mubr.bf16.gmra.mxu1 %v2443_v35 }
 0x157   :  { %v1577_v41 = vadd.f32 %v1576_v40, %v1287_v39 }
 0x158   :  { %v1289_v42 = vpop.f32.mrf.mxu0  ;;  %v1578_v43 = vpop.f32.mrf.mxu1 }
 0x159   :  { %1984 = vst [vmem:[#allocation8 + $0x70] sm:$0xff] %v1577_v41 }
 0x15a   :  { %v1290_v44 = vpop.f32.mrf.mxu0  ;;  %v1579_v45 = vpop.f32.mrf.mxu1 }
 0x15b   :  { %v1580_v46 = vadd.f32 %v1579_v45, %v1290_v44 }
 0x15c   :  { %v1292_v47 = vpop.f32.mrf.mxu0  ;;  %v1581_v48 = vpop.f32.mrf.mxu1 }
 0x15d   :  { %1985 = vst [vmem:[#allocation8 + $0x78] sm:$0xff] %v1580_v46 }
 0x15e   :  { %v1295_v49 = vpop.f32.mrf.mxu0  ;;  %v1584_v50 = vpop.f32.mrf.mxu1 }
 0x15f   :  { %v1585_v51 = vadd.f32 %v1584_v50, %v1295_v49 }
 0x160   :  { %v1297_v52 = vpop.f32.mrf.mxu0  ;;  %v1586_v53 = vpop.f32.mrf.mxu1 }
 0x161   :  { %1986 = vst [vmem:[#allocation8 + $0x80] sm:$0xff] %v1585_v51 }
 0x162   :  { %v1298_v54 = vpop.f32.mrf.mxu0  ;;  %v1587_v55 = vpop.f32.mrf.mxu1 }
 0x163   :  { %v1588_v56 = vadd.f32 %v1587_v55, %v1298_v54 }
 0x164   :  { %v1300_v57 = vpop.f32.mrf.mxu0  ;;  %v1589_v58 = vpop.f32.mrf.mxu1 }
 0x165   :  { %1987 = vst [vmem:[#allocation8 + $0x88] sm:$0xff] %v1588_v56 }
 0x166   :  { %v1303_v59 = vpop.f32.mrf.mxu0  ;;  %v1592_v60 = vpop.f32.mrf.mxu1 }
 0x167   :  { %v1593_v61 = vadd.f32 %v1592_v60, %v1303_v59 }
 0x168   :  { %v1305_v62 = vpop.f32.mrf.mxu0  ;;  %v1594_v63 = vpop.f32.mrf.mxu1 }
 0x169   :  { %1988 = vst [vmem:[#allocation8 + $0x90] sm:$0xff] %v1593_v61 }
 0x16a   :  { %v1306_v0 = vpop.f32.mrf.mxu0  ;;  %v1595_v1 = vpop.f32.mrf.mxu1 }
 0x16b   :  { %v1596_v2 = vadd.f32 %v1595_v1, %v1306_v0 }
 0x16c   :  { %v1308_v3 = vpop.f32.mrf.mxu0  ;;  %v1597_v4 = vpop.f32.mrf.mxu1 }
 0x16d   :  { %1989 = vst [vmem:[#allocation8 + $0x98] sm:$0xff] %v1596_v2 }
 0x16e   :  { %v1311_v5 = vpop.f32.mrf.mxu0  ;;  %v1600_v6 = vpop.f32.mrf.mxu1 }
 0x16f   :  { %v1601_v7 = vadd.f32 %v1600_v6, %v1311_v5 }
 0x170   :  { %v1313_v8 = vpop.f32.mrf.mxu0  ;;  %v1602_v9 = vpop.f32.mrf.mxu1 }
 0x171   :  { %1990 = vst [vmem:[#allocation8 + $0xa0] sm:$0xff] %v1601_v7 }
 0x172   :  { %v1314_v10 = vpop.f32.mrf.mxu0  ;;  %v1603_v11 = vpop.f32.mrf.mxu1 }
 0x173   :  { %v1604_v12 = vadd.f32 %v1603_v11, %v1314_v10 }
 0x174   :  { %v1316_v13 = vpop.f32.mrf.mxu0  ;;  %v1605_v14 = vpop.f32.mrf.mxu1 }
 0x175   :  { %1991 = vst [vmem:[#allocation8 + $0xa8] sm:$0xff] %v1604_v12 }
 0x176   :  { %v1319_v15 = vpop.f32.mrf.mxu0  ;;  %v1608_v16 = vpop.f32.mrf.mxu1 }
 0x177   :  { %v1609_v17 = vadd.f32 %v1608_v16, %v1319_v15 }
 0x178   :  { %v1321_v18 = vpop.f32.mrf.mxu0  ;;  %v1610_v19 = vpop.f32.mrf.mxu1 }
 0x179   :  { %1992 = vst [vmem:[#allocation8 + $0xb0] sm:$0xff] %v1609_v17 }
 0x17a   :  { %v1322_v20 = vpop.f32.mrf.mxu0  ;;  %v1611_v21 = vpop.f32.mrf.mxu1 }
 0x17b   :  { %v1612_v22 = vadd.f32 %v1611_v21, %v1322_v20 }
 0x17c   :  { %v1324_v23 = vpop.f32.mrf.mxu0  ;;  %v1613_v24 = vpop.f32.mrf.mxu1 }
 0x17d   :  { %1993 = vst [vmem:[#allocation8 + $0xb8] sm:$0xff] %v1612_v22 }
 0x17e   :  { %v1327_v25 = vpop.f32.mrf.mxu0  ;;  %v1616_v26 = vpop.f32.mrf.mxu1 }
 0x17f   :  { %v1617_v27 = vadd.f32 %v1616_v26, %v1327_v25 }
 0x180   :  { %v1329_v28 = vpop.f32.mrf.mxu0  ;;  %v1618_v29 = vpop.f32.mrf.mxu1 }
 0x181   :  { %1994 = vst [vmem:[#allocation8 + $0xc0] sm:$0xff] %v1617_v27 }
 0x182   :  { %v1330_v30 = vpop.f32.mrf.mxu0  ;;  %v1619_v31 = vpop.f32.mrf.mxu1 }
 0x183   :  { %v1620_v32 = vadd.f32 %v1619_v31, %v1330_v30 }
 0x184   :  { %v1332_v33 = vpop.f32.mrf.mxu0  ;;  %v1621_v34 = vpop.f32.mrf.mxu1 }
 0x185   :  { %1995 = vst [vmem:[#allocation8 + $0xc8] sm:$0xff] %v1620_v32 }
 0x186   :  { %v1335_v35 = vpop.f32.mrf.mxu0  ;;  %v1624_v36 = vpop.f32.mrf.mxu1 }
 0x187   :  { %v1625_v37 = vadd.f32 %v1624_v36, %v1335_v35 }
 0x188   :  { %v1337_v38 = vpop.f32.mrf.mxu0  ;;  %v1626_v39 = vpop.f32.mrf.mxu1 }
 0x189   :  { %1996 = vst [vmem:[#allocation8 + $0xd0] sm:$0xff] %v1625_v37 }
 0x18a   :  { %v1338_v40 = vpop.f32.mrf.mxu0  ;;  %v1627_v41 = vpop.f32.mrf.mxu1 }
 0x18b   :  { %v1628_v42 = vadd.f32 %v1627_v41, %v1338_v40 }
 0x18c   :  { %v1340_v43 = vpop.f32.mrf.mxu0  ;;  %v1629_v44 = vpop.f32.mrf.mxu1 }
 0x18d   :  { %1997 = vst [vmem:[#allocation8 + $0xd8] sm:$0xff] %v1628_v42 }
 0x18e   :  { %v1343_v45 = vpop.f32.mrf.mxu0  ;;  %v1632_v46 = vpop.f32.mrf.mxu1 }
 0x18f   :  { %v1633_v47 = vadd.f32 %v1632_v46, %v1343_v45 }
 0x190   :  { %v1345_v48 = vpop.f32.mrf.mxu0  ;;  %v1634_v49 = vpop.f32.mrf.mxu1 }
 0x191   :  { %1998 = vst [vmem:[#allocation8 + $0xe0] sm:$0xff] %v1633_v47 }
 0x192   :  { %v1346_v50 = vpop.f32.mrf.mxu0  ;;  %v1635_v51 = vpop.f32.mrf.mxu1 }
 0x193   :  { %v1636_v52 = vadd.f32 %v1635_v51, %v1346_v50 }
 0x194   :  { %v1348_v53 = vpop.f32.mrf.mxu0  ;;  %v1637_v54 = vpop.f32.mrf.mxu1 }
 0x195   :  { %1999 = vst [vmem:[#allocation8 + $0xe8] sm:$0xff] %v1636_v52 }
 0x196   :  { %v1351_v55 = vpop.f32.mrf.mxu0  ;;  %v1640_v56 = vpop.f32.mrf.mxu1 }
 0x197   :  { %v1641_v57 = vadd.f32 %v1640_v56, %v1351_v55 }
 0x198   :  { %v1353_v58 = vpop.f32.mrf.mxu0  ;;  %v1642_v59 = vpop.f32.mrf.mxu1 }
 0x199   :  { %2000 = vst [vmem:[#allocation8 + $0xf0] sm:$0xff] %v1641_v57 }
 0x19a   :  { %v1354_v60 = vpop.f32.mrf.mxu0  ;;  %v1643_v61 = vpop.f32.mrf.mxu1 }
 0x19b   :  { %v1644_v62 = vadd.f32 %v1643_v61, %v1354_v60 }
 0x19c   :  { %v1356_v63 = vpop.f32.mrf.mxu0  ;;  %v1645_v0 = vpop.f32.mrf.mxu1 }
 0x19d   :  { %2001 = vst [vmem:[#allocation8 + $0xf8] sm:$0xff] %v1644_v62 }
 0x19e   :  { %v1359_v1 = vpop.f32.mrf.mxu0  ;;  %v1648_v2 = vpop.f32.mrf.mxu1 }
 0x19f   :  { %v1649_v3 = vadd.f32 %v1648_v2, %v1359_v1 }
 0x1a0   :  { %v1361_v4 = vpop.f32.mrf.mxu0  ;;  %v1650_v5 = vpop.f32.mrf.mxu1 }
 0x1a1   :  { %2002 = vst [vmem:[#allocation8 + $0x100] sm:$0xff] %v1649_v3 }
 0x1a2   :  { %v1362_v6 = vpop.f32.mrf.mxu0  ;;  %v1651_v7 = vpop.f32.mrf.mxu1 }
 0x1a3   :  { %v1652_v8 = vadd.f32 %v1651_v7, %v1362_v6 }
 0x1a4   :  { %v1364_v9 = vpop.f32.mrf.mxu0  ;;  %v1653_v10 = vpop.f32.mrf.mxu1 }
 0x1a5   :  { %2003 = vst [vmem:[#allocation8 + $0x108] sm:$0xff] %v1652_v8 }
 0x1a6   :  { %v1367_v11 = vpop.f32.mrf.mxu0  ;;  %v1656_v12 = vpop.f32.mrf.mxu1 }
 0x1a7   :  { %v1657_v13 = vadd.f32 %v1656_v12, %v1367_v11 }
 0x1a8   :  { %v1369_v14 = vpop.f32.mrf.mxu0  ;;  %v1658_v15 = vpop.f32.mrf.mxu1 }
 0x1a9   :  { %2004 = vst [vmem:[#allocation8 + $0x110] sm:$0xff] %v1657_v13 }
 0x1aa   :  { %v1370_v16 = vpop.f32.mrf.mxu0  ;;  %v1659_v17 = vpop.f32.mrf.mxu1 }
 0x1ab   :  { %v1660_v18 = vadd.f32 %v1659_v17, %v1370_v16 }
 0x1ac   :  { %v1372_v19 = vpop.f32.mrf.mxu0  ;;  %v1661_v20 = vpop.f32.mrf.mxu1 }
 0x1ad   :  { %2005 = vst [vmem:[#allocation8 + $0x118] sm:$0xff] %v1660_v18 }
 0x1ae   :  { %v1375_v21 = vpop.f32.mrf.mxu0  ;;  %v1664_v22 = vpop.f32.mrf.mxu1 }
 0x1af   :  { %v1665_v23 = vadd.f32 %v1664_v22, %v1375_v21 }
 0x1b0   :  { %v1377_v24 = vpop.f32.mrf.mxu0  ;;  %v1666_v25 = vpop.f32.mrf.mxu1 }
 0x1b1   :  { %2006 = vst [vmem:[#allocation8 + $0x120] sm:$0xff] %v1665_v23 }
 0x1b2   :  { %v1378_v26 = vpop.f32.mrf.mxu0  ;;  %v1667_v27 = vpop.f32.mrf.mxu1 }
 0x1b3   :  { %v1668_v28 = vadd.f32 %v1667_v27, %v1378_v26 }
 0x1b4   :  { %v1380_v29 = vpop.f32.mrf.mxu0  ;;  %v1669_v30 = vpop.f32.mrf.mxu1 }
 0x1b5   :  { %2007 = vst [vmem:[#allocation8 + $0x128] sm:$0xff] %v1668_v28 }
 0x1b6   :  { %v1383_v31 = vpop.f32.mrf.mxu0  ;;  %v1672_v32 = vpop.f32.mrf.mxu1 }
 0x1b7   :  { %v1673_v33 = vadd.f32 %v1672_v32, %v1383_v31 }
 0x1b8   :  { %v1385_v34 = vpop.f32.mrf.mxu0  ;;  %v1674_v35 = vpop.f32.mrf.mxu1 }
 0x1b9   :  { %2008 = vst [vmem:[#allocation8 + $0x130] sm:$0xff] %v1673_v33 }
 0x1ba   :  { %v1386_v36 = vpop.f32.mrf.mxu0  ;;  %v1675_v37 = vpop.f32.mrf.mxu1 }
 0x1bb   :  { %v1676_v38 = vadd.f32 %v1675_v37, %v1386_v36 }
 0x1bc   :  { %v1388_v39 = vpop.f32.mrf.mxu0  ;;  %v1677_v40 = vpop.f32.mrf.mxu1 }
 0x1bd   :  { %2009 = vst [vmem:[#allocation8 + $0x138] sm:$0xff] %v1676_v38 }
 0x1be   :  { %v1391_v41 = vpop.f32.mrf.mxu0  ;;  %v1680_v42 = vpop.f32.mrf.mxu1 }
 0x1bf   :  { %v1681_v43 = vadd.f32 %v1680_v42, %v1391_v41 }
 0x1c0   :  { %v1393_v44 = vpop.f32.mrf.mxu0  ;;  %v1682_v45 = vpop.f32.mrf.mxu1 }
 0x1c1   :  { %2010 = vst [vmem:[#allocation8 + $0x140] sm:$0xff] %v1681_v43 }
 0x1c2   :  { %v1394_v46 = vpop.f32.mrf.mxu0  ;;  %v1683_v47 = vpop.f32.mrf.mxu1 }
 0x1c3   :  { %v1684_v48 = vadd.f32 %v1683_v47, %v1394_v46 }
 0x1c4   :  { %v1396_v49 = vpop.f32.mrf.mxu0  ;;  %v1685_v50 = vpop.f32.mrf.mxu1 }
 0x1c5   :  { %2011 = vst [vmem:[#allocation8 + $0x148] sm:$0xff] %v1684_v48 }
 0x1c6   :  { %v1399_v51 = vpop.f32.mrf.mxu0  ;;  %v1688_v52 = vpop.f32.mrf.mxu1 }
 0x1c7   :  { %v1689_v53 = vadd.f32 %v1688_v52, %v1399_v51 }
 0x1c8   :  { %v1401_v54 = vpop.f32.mrf.mxu0  ;;  %v1690_v55 = vpop.f32.mrf.mxu1 }
 0x1c9   :  { %2012 = vst [vmem:[#allocation8 + $0x150] sm:$0xff] %v1689_v53 }
 0x1ca   :  { %v1402_v56 = vpop.f32.mrf.mxu0  ;;  %v1691_v57 = vpop.f32.mrf.mxu1 }
 0x1cb   :  { %v1692_v58 = vadd.f32 %v1691_v57, %v1402_v56 }
 0x1cc   :  { %v1404_v59 = vpop.f32.mrf.mxu0  ;;  %v1693_v60 = vpop.f32.mrf.mxu1 }
 0x1cd   :  { %2013 = vst [vmem:[#allocation8 + $0x158] sm:$0xff] %v1692_v58 }
 0x1ce   :  { %v1407_v61 = vpop.f32.mrf.mxu0  ;;  %v1696_v62 = vpop.f32.mrf.mxu1 }
 0x1cf   :  { %v1697_v63 = vadd.f32 %v1696_v62, %v1407_v61 }
 0x1d0   :  { %v1409_v0 = vpop.f32.mrf.mxu0  ;;  %v1698_v1 = vpop.f32.mrf.mxu1 }
 0x1d1   :  { %2014 = vst [vmem:[#allocation8 + $0x160] sm:$0xff] %v1697_v63 }
 0x1d2   :  { %v1410_v2 = vpop.f32.mrf.mxu0  ;;  %v1699_v3 = vpop.f32.mrf.mxu1 }
 0x1d3   :  { %v1700_v4 = vadd.f32 %v1699_v3, %v1410_v2 }
 0x1d4   :  { %v1412_v5 = vpop.f32.mrf.mxu0  ;;  %v1701_v6 = vpop.f32.mrf.mxu1 }
 0x1d5   :  { %2015 = vst [vmem:[#allocation8 + $0x168] sm:$0xff] %v1700_v4 }
 0x1d6   :  { %v1415_v7 = vpop.f32.mrf.mxu0  ;;  %v1704_v8 = vpop.f32.mrf.mxu1 }
 0x1d7   :  { %v1705_v9 = vadd.f32 %v1704_v8, %v1415_v7 }
 0x1d8   :  { %v1417_v10 = vpop.f32.mrf.mxu0  ;;  %v1706_v11 = vpop.f32.mrf.mxu1 }
 0x1d9   :  { %2016 = vst [vmem:[#allocation8 + $0x170] sm:$0xff] %v1705_v9 }
 0x1da   :  { %v1418_v12 = vpop.f32.mrf.mxu0  ;;  %v1707_v13 = vpop.f32.mrf.mxu1 }
 0x1db   :  { %v1708_v14 = vadd.f32 %v1707_v13, %v1418_v12 }
 0x1dc   :  { %v1420_v15 = vpop.f32.mrf.mxu0  ;;  %v1709_v16 = vpop.f32.mrf.mxu1 }
 0x1dd   :  { %2017 = vst [vmem:[#allocation8 + $0x178] sm:$0xff] %v1708_v14 }
 0x1de   :  { %v1423_v17 = vpop.f32.mrf.mxu0  ;;  %v1712_v18 = vpop.f32.mrf.mxu1 }
 0x1df   :  { %v1713_v19 = vadd.f32 %v1712_v18, %v1423_v17 }
 0x1e0   :  { %v1425_v20 = vpop.f32.mrf.mxu0  ;;  %v1714_v21 = vpop.f32.mrf.mxu1 }
 0x1e1   :  { %2018 = vst [vmem:[#allocation8 + $0x180] sm:$0xff] %v1713_v19 }
 0x1e2   :  { %v1426_v22 = vpop.f32.mrf.mxu0  ;;  %v1715_v23 = vpop.f32.mrf.mxu1 }
 0x1e3   :  { %v1716_v24 = vadd.f32 %v1715_v23, %v1426_v22 }
 0x1e4   :  { %v1428_v25 = vpop.f32.mrf.mxu0  ;;  %v1717_v26 = vpop.f32.mrf.mxu1 }
 0x1e5   :  { %2019 = vst [vmem:[#allocation8 + $0x188] sm:$0xff] %v1716_v24 }
 0x1e6   :  { %v1431_v27 = vpop.f32.mrf.mxu0  ;;  %v1720_v28 = vpop.f32.mrf.mxu1 }
 0x1e7   :  { %v1721_v29 = vadd.f32 %v1720_v28, %v1431_v27 }
 0x1e8   :  { %v1433_v30 = vpop.f32.mrf.mxu0  ;;  %v1722_v31 = vpop.f32.mrf.mxu1 }
 0x1e9   :  { %2020 = vst [vmem:[#allocation8 + $0x190] sm:$0xff] %v1721_v29 }
 0x1ea   :  { %v1434_v32 = vpop.f32.mrf.mxu0  ;;  %v1723_v33 = vpop.f32.mrf.mxu1 }
 0x1eb   :  { %v1724_v34 = vadd.f32 %v1723_v33, %v1434_v32 }
 0x1ec   :  { %v1436_v35 = vpop.f32.mrf.mxu0  ;;  %v1725_v36 = vpop.f32.mrf.mxu1 }
 0x1ed   :  { %2021 = vst [vmem:[#allocation8 + $0x198] sm:$0xff] %v1724_v34 }
 0x1ee   :  { %v1439_v37 = vpop.f32.mrf.mxu0  ;;  %v1728_v38 = vpop.f32.mrf.mxu1 }
 0x1ef   :  { %v1729_v39 = vadd.f32 %v1728_v38, %v1439_v37 }
 0x1f0   :  { %v1441_v40 = vpop.f32.mrf.mxu0  ;;  %v1730_v41 = vpop.f32.mrf.mxu1 }
 0x1f1   :  { %2022 = vst [vmem:[#allocation8 + $0x1a0] sm:$0xff] %v1729_v39 }
 0x1f2   :  { %v1442_v42 = vpop.f32.mrf.mxu0  ;;  %v1731_v43 = vpop.f32.mrf.mxu1 }
 0x1f3   :  { %v1732_v44 = vadd.f32 %v1731_v43, %v1442_v42 }
 0x1f4   :  { %v1444_v45 = vpop.f32.mrf.mxu0  ;;  %v1733_v46 = vpop.f32.mrf.mxu1 }
 0x1f5   :  { %2023 = vst [vmem:[#allocation8 + $0x1a8] sm:$0xff] %v1732_v44 }
 0x1f6   :  { %v1447_v47 = vpop.f32.mrf.mxu0  ;;  %v1736_v48 = vpop.f32.mrf.mxu1 }
 0x1f7   :  { %v1737_v49 = vadd.f32 %v1736_v48, %v1447_v47 }
 0x1f8   :  { %v1449_v50 = vpop.f32.mrf.mxu0  ;;  %v1738_v51 = vpop.f32.mrf.mxu1 }
 0x1f9   :  { %2024 = vst [vmem:[#allocation8 + $0x1b0] sm:$0xff] %v1737_v49 }
 0x1fa   :  { %v1450_v52 = vpop.f32.mrf.mxu0  ;;  %v1739_v53 = vpop.f32.mrf.mxu1 }
 0x1fb   :  { %v1740_v54 = vadd.f32 %v1739_v53, %v1450_v52 }
 0x1fc   :  { %v1452_v55 = vpop.f32.mrf.mxu0  ;;  %v1741_v56 = vpop.f32.mrf.mxu1 }
 0x1fd   :  { %2025 = vst [vmem:[#allocation8 + $0x1b8] sm:$0xff] %v1740_v54 }
 0x1fe   :  { %v1455_v57 = vpop.f32.mrf.mxu0  ;;  %v1744_v58 = vpop.f32.mrf.mxu1 }
 0x1ff   :  { %v1745_v59 = vadd.f32 %v1744_v58, %v1455_v57 }
 0x200   :  { %v1457_v60 = vpop.f32.mrf.mxu0  ;;  %v1746_v61 = vpop.f32.mrf.mxu1 }
 0x201   :  { %2026 = vst [vmem:[#allocation8 + $0x1c0] sm:$0xff] %v1745_v59 }
 0x202   :  { %v1458_v62 = vpop.f32.mrf.mxu0  ;;  %v1747_v63 = vpop.f32.mrf.mxu1 }
 0x203   :  { %v1748_v0 = vadd.f32 %v1747_v63, %v1458_v62 }
 0x204   :  { %v1460_v1 = vpop.f32.mrf.mxu0  ;;  %v1749_v2 = vpop.f32.mrf.mxu1 }
 0x205   :  { %2027 = vst [vmem:[#allocation8 + $0x1c8] sm:$0xff] %v1748_v0 }
 0x206   :  { %v1463_v3 = vpop.f32.mrf.mxu0  ;;  %v1752_v4 = vpop.f32.mrf.mxu1 }
 0x207   :  { %v1753_v5 = vadd.f32 %v1752_v4, %v1463_v3 }
 0x208   :  { %v1465_v6 = vpop.f32.mrf.mxu0  ;;  %v1754_v7 = vpop.f32.mrf.mxu1 }
 0x209   :  { %2028 = vst [vmem:[#allocation8 + $0x1d0] sm:$0xff] %v1753_v5 }
 0x20a   :  { %v1466_v8 = vpop.f32.mrf.mxu0  ;;  %v1755_v9 = vpop.f32.mrf.mxu1 }
 0x20b   :  { %v1756_v10 = vadd.f32 %v1755_v9, %v1466_v8 }
 0x20c   :  { %v1468_v11 = vpop.f32.mrf.mxu0  ;;  %v1757_v12 = vpop.f32.mrf.mxu1 }
 0x20d   :  { %2029 = vst [vmem:[#allocation8 + $0x1d8] sm:$0xff] %v1756_v10 }
 0x20e   :  { %v1471_v13 = vpop.f32.mrf.mxu0  ;;  %v1760_v14 = vpop.f32.mrf.mxu1 }
 0x20f   :  { %v1761_v15 = vadd.f32 %v1760_v14, %v1471_v13 }
 0x210   :  { %v1473_v16 = vpop.f32.mrf.mxu0  ;;  %v1762_v17 = vpop.f32.mrf.mxu1 }
 0x211   :  { %2030 = vst [vmem:[#allocation8 + $0x1e0] sm:$0xff] %v1761_v15 }
 0x212   :  { %v1474_v18 = vpop.f32.mrf.mxu0  ;;  %v1763_v19 = vpop.f32.mrf.mxu1 }
 0x213   :  { %v1764_v20 = vadd.f32 %v1763_v19, %v1474_v18 }
 0x214   :  { %v1476_v21 = vpop.f32.mrf.mxu0  ;;  %v1765_v22 = vpop.f32.mrf.mxu1 }
 0x215   :  { %2031 = vst [vmem:[#allocation8 + $0x1e8] sm:$0xff] %v1764_v20 }
 0x216   :  { %v1479_v23 = vpop.f32.mrf.mxu0  ;;  %v1768_v24 = vpop.f32.mrf.mxu1 }
 0x217   :  { %v1769_v25 = vadd.f32 %v1768_v24, %v1479_v23 }
 0x218   :  { %v1481_v26 = vpop.f32.mrf.mxu0  ;;  %v1770_v27 = vpop.f32.mrf.mxu1 }
 0x219   :  { %2032 = vst [vmem:[#allocation8 + $0x1f0] sm:$0xff] %v1769_v25 }
 0x21a   :  { %v1482_v28 = vpop.f32.mrf.mxu0  ;;  %v1771_v29 = vpop.f32.mrf.mxu1 }
 0x21b   :  { %v1772_v30 = vadd.f32 %v1771_v29, %v1482_v28 }
 0x21c   :  { %v1484_v31 = vpop.f32.mrf.mxu0  ;;  %v1773_v32 = vpop.f32.mrf.mxu1 }
 0x21d   :  { %2033 = vst [vmem:[#allocation8 + $0x1f8] sm:$0xff] %v1772_v30 }
 0x21e   :  { %2497 = shalt.err (!%p2494_p0)
}
 0x21f   :  { %s2520_s24 = smov 128   ;;  %s2521_s25 = smov 8  }
 0x220   :  { %2045 = dma.vmem_to_hbm [thread:$0]  %s2040_s1, 8192, %s2580_s2, [#allocation5], %s2520_s24, %s2520_s24, %s2521_s25  }
 0x221   :  { %2510 = dma.done.wait [#allocation5], 8192  }
 0x222   :  { %2511 = vsyncadd [#allocation5], 4294959104 }
 0x223   :  { %2049 = vsyncpa [#allocation4], 1 }
 0x224   :  { %2050 = vsyncpa [#allocation7], 1 }
 0x225   :  { %2051 = vsyncpa [#allocation5], 1 }

</bundles_post_ra>
